<compile_context>
chip_gen: v6e
topology: v6e:2x2x1
jax: 0.10.0
libtpu: 0.0.40
codegen_flags: <defaults>
</compile_context>

<pallas_src>
import functools

import jax
import jax.numpy as jnp
from jax import lax
from jax.experimental import pallas as pl
from jax.experimental.pallas import tpu as pltpu


def _focal_power(base, gamma):
    """base ** gamma, specialized at trace time (gamma is a Python float)."""
    g = float(gamma)
    if g.is_integer() and 1.0 <= g <= 4.0:
        # Common integer case (gamma=1,2,3,4): repeated VPU multiplies, no EUP pow.
        out = base
        for _ in range(int(g) - 1):
            out = out * base
        return out
    return base ** g  # pow -> exp(g * log(base)); base already clamped >= 0


def _vmem_capacity_bytes():
    """Physical VMEM per TensorCore; conservative fallback if query fails."""
    try:
        info = pltpu.get_tpu_info()
        cap = getattr(info, "vmem_capacity_bytes", None)
        if cap:
            return int(cap)
    except Exception:
        pass
    return 64 << 20  # v7x-sized fallback (smallest of the supported chips)


def focal_loss_kernel(x_ref, t_ref, w_ref, out_ref, *, gamma, n_rows):
    """x_ref: (TN, C) logits (native dtype, possibly ragged last block),
    t_ref: (TN, 1) int32 targets, w_ref: (TN, 1) f32 per-example class weights,
    out_ref: (1, 8, 128) fused partials (num on sublane 0, den on sublane 1)."""
    x = x_ref[...]                               # (TN, C) native dtype
    t = t_ref[...]                               # (TN, 1) int32
    ws = w_ref[...]                              # (TN, 1) f32
    tn, c = x.shape

    # Row-validity mask for the ragged last tile: logits are NOT padded in HBM,
    # so the boundary block's tail rows hold unspecified data.  Masking is done
    # with selects at the end; garbage rows only ever affect themselves because
    # every (TN, C) reduction below is per-row.
    row = lax.broadcasted_iota(jnp.int32, (tn, 1), 0)
    valid = (pl.program_id(0) * tn + row) < n_rows                    # (TN, 1)

    # Target one-hot mask — applied BEFORE the focal math ("pick-first").
    col = lax.broadcasted_iota(jnp.int32, (tn, c), 1)
    onehot = col == t                                                  # (TN, C)

    # ---- numerically-stable log-softmax statistics; one (TN, C) EUP pass ----
    xf = x.astype(jnp.float32)                    # no-op for f32 inputs
    m = jnp.max(xf, axis=-1, keepdims=True)       # (TN, 1)
    e = jnp.exp(xf - m)                           # (TN, C) f32
    sum_e = jnp.sum(e, axis=-1, keepdims=True)    # (TN, 1)

    # ---- pick the target column of x and e; everything below is (TN, 1) ----
    x_t = jnp.sum(jnp.where(onehot, xf, 0.0), axis=-1, keepdims=True)  # (TN, 1)
    e_t = jnp.sum(jnp.where(onehot, e, 0.0), axis=-1, keepdims=True)   # (TN, 1)
    log_prob_t = (x_t - m) - jnp.log(sum_e)                            # (TN, 1)
    prob_t = e_t / sum_e                                               # (TN, 1)

    if float(gamma) == 0.0:
        focal_t = log_prob_t
    else:
        base = jnp.maximum(1.0 - prob_t, 0.0)     # guard ulp overshoot (pow NaN)
        focal_t = _focal_power(base, gamma) * log_prob_t

    # Select (not multiply) so NaN/inf from garbage tail rows cannot leak.
    per_example = jnp.where(valid, -ws * focal_t, 0.0)                 # (TN, 1)
    ws_v = jnp.where(valid, ws, 0.0)                                   # (TN, 1)

    num = jnp.sum(per_example, axis=0, keepdims=True)                  # (1, 1)
    den = jnp.sum(ws_v, axis=0, keepdims=True)                         # (1, 1)

    # Fused partial output: numerator on sublane 0, denominator on sublane 1.
    sub = lax.broadcasted_iota(jnp.int32, (1, 8, 128), 1)
    out_ref[...] = jnp.where(sub == 0, num, 0.0) + jnp.where(sub == 1, den, 0.0)


def focal_loss(logits, target, weight=None, gamma=0.0, *, block_rows=None):
    """Pallas FocalLoss forward. logits: (N, C) (f32 or bf16), target: (N,) int,
    weight: (C,) or None. Matches PyTorch 'mean' reduction semantics."""
    N, C = logits.shape
    if weight is None:
        weight = jnp.ones((C,), dtype=jnp.float32)
    weight = weight.astype(jnp.float32)

    # Gather per-example class weight in the wrapper (N scalars; negligible HBM).
    wsel = weight[target]                                              # (N,)

    # ---- VMEM-aware row-tile sizing (full C per tile) ----
    vmem_cap = _vmem_capacity_bytes()
    vmem_limit = min(vmem_cap // 2, 64 << 20)     # 32 MiB on v7x, 64 MiB on v5e/v6e
    itemsize = jnp.dtype(logits.dtype).itemsize
    if block_rows is None:
        k_live = 3  # simultaneously-live f32 (TN, C) temporaries after pick-first
        per_row = (2 * itemsize + k_live * 4) * max(C, 128)
        tn = (2 * vmem_limit // 3) // per_row     # leave 1/3 scoped-VMEM headroom
        tn = max(8, min(1024, (tn // 8) * 8))
    else:
        tn = max(8, (int(block_rows) // 8) * 8)
    tn = min(tn, ((N + 7) // 8) * 8)              # don't over-size for tiny N

    nb = pl.cdiv(N, tn)
    n_pad = nb * tn
    pad = n_pad - N

    # Only the cheap N-length vectors are padded; padded rows carry weight 0.
    # The (N, C) logits are fed unpadded — the ragged last tile is masked
    # inside the kernel (no extra HBM read+write pre-pass).
    t2 = jnp.pad(target.astype(jnp.int32), (0, pad)).reshape(n_pad, 1)
    w2 = jnp.pad(wsel.astype(jnp.float32), (0, pad)).reshape(n_pad, 1)

    kernel = functools.partial(focal_loss_kernel, gamma=float(gamma), n_rows=N)

    cost = pl.CostEstimate(
        flops=8 * N * C,
        transcendentals=N * C + 2 * N,            # one exp pass; log/pow on (N, 1)
        bytes_accessed=int(N * C * itemsize + n_pad * 8 + nb * 8 * 128 * 4),
    )

    partials = pl.pallas_call(
        kernel,
        grid=(nb,),
        in_specs=[
            pl.BlockSpec((tn, C), lambda i: (i, 0)),
            pl.BlockSpec((tn, 1), lambda i: (i, 0)),
            pl.BlockSpec((tn, 1), lambda i: (i, 0)),
        ],
        out_specs=pl.BlockSpec((1, 8, 128), lambda i: (i, 0, 0)),
        out_shape=jax.ShapeDtypeStruct((nb, 8, 128), jnp.float32),
        compiler_params=pltpu.CompilerParams(
            dimension_semantics=("parallel",),     # shard row blocks across TCs
            vmem_limit_bytes=vmem_limit,
        ),
        cost_estimate=cost,
    )(logits, t2, w2)

    num = jnp.sum(partials[:, 0, 0])
    den = jnp.sum(partials[:, 1, 0])
    return num / den                               # exact final division


def focal_loss_ref(logits, target, weight=None, gamma=0.0):
    """Pure-JAX reference replicating the PyTorch module exactly."""
    C = logits.shape[-1]
    if weight is None:
        weight = jnp.ones((C,), dtype=jnp.float32)
    log_prob = jax.nn.log_softmax(logits.astype(jnp.float32), axis=-1)
    prob = jnp.exp(log_prob)
    focal = ((1.0 - prob) ** gamma) * log_prob
    picked = jnp.take_along_axis(focal, target[:, None], axis=-1)[:, 0]
    wsel = weight[target].astype(jnp.float32)
    return jnp.sum(-wsel * picked) / jnp.sum(wsel)   # 'mean' with class weights


if __name__ == "__main__":
    key = jax.random.PRNGKey(0)
    k1, k2 = jax.random.split(key)

    # Small deterministic example; N not a multiple of the tile exercises the
    # ragged-last-tile mask + multi-block grid (no logits padding in HBM).
    N, C = 13, 32
    logits = jax.random.normal(k1, (N, C), dtype=jnp.float32)
    target = jax.random.randint(k2, (N,), 0, C, dtype=jnp.int32)
    weight = jnp.linspace(0.5, 1.5, C, dtype=jnp.float32)

    # gamma=2.0 -> integer-specialized VPU path; 0.0 -> no modulation;
    # 1.5 -> real pow path (weight=None -> plain mean over N).
    for gamma, w in [(2.0, weight), (0.0, weight), (1.5, None)]:
        loss = jax.block_until_ready(
            focal_loss(logits, target, w, gamma=gamma, block_rows=8))
        ref = focal_loss_ref(logits, target, w, gamma=gamma)
        assert jnp.allclose(loss, ref, rtol=1e-5, atol=1e-5), (gamma, loss, ref)

    # Auto tile sizing (single block) + bf16 logits fed natively and upcast
    # per-tile inside the kernel.
    logits_bf16 = logits.astype(jnp.bfloat16)
    loss_bf = jax.block_until_ready(
        focal_loss(logits_bf16, target, weight, gamma=2.0))
    ref_bf = focal_loss_ref(logits_bf16, target, weight, gamma=2.0)
    assert jnp.allclose(loss_bf, ref_bf, rtol=1e-4, atol=1e-4), (loss_bf, ref_bf)

    print("KERNEL_OK")
</pallas_src>

<mosaic_0001>
module attributes {stable_mosaic.version = 11 : i64} {
  func.func @focal_loss_kernel(%arg0: i32, %arg1: memref<8x32xf32, #tpu.memory_space<vmem>>, %arg2: memref<8x1xi32, #tpu.memory_space<vmem>>, %arg3: memref<8x1xf32, #tpu.memory_space<vmem>>, %arg4: memref<1x8x128xf32, #tpu.memory_space<vmem>>) attributes {dimension_semantics = [#tpu.dimension_semantics<parallel>], iteration_bounds = array<i64: 2>, scalar_prefetch = 0 : i64, scratch_operands = 0 : i64, tpu.core_type = #tpu.core_type<tc>, window_params = [{transform_indices = @transform_0, window_bounds = array<i64: 8, 32>}, {transform_indices = @transform_1, window_bounds = array<i64: 8, 1>}, {transform_indices = @transform_2, window_bounds = array<i64: 8, 1>}, {transform_indices = @transform_3, window_bounds = array<i64: 1, 8, 128>}]} {
    %c0 = arith.constant 0 : index
    %c0_0 = arith.constant 0 : index
    %0 = vector.load %arg1[%c0, %c0_0] : memref<8x32xf32, #tpu.memory_space<vmem>>, vector<8x32xf32>
    %c0_1 = arith.constant 0 : index
    %c0_2 = arith.constant 0 : index
    %1 = vector.load %arg2[%c0_1, %c0_2] : memref<8x1xi32, #tpu.memory_space<vmem>>, vector<8x1xi32>
    %c0_3 = arith.constant 0 : index
    %c0_4 = arith.constant 0 : index
    %2 = vector.load %arg3[%c0_3, %c0_4] : memref<8x1xf32, #tpu.memory_space<vmem>>, vector<8x1xf32>
    %3 = tpu.iota {dimensions = array<i32: 0>} : vector<8x1xi32>
    %c8_i32 = arith.constant 8 : i32
    %4 = arith.muli %arg0, %c8_i32 : i32
    %5 = vector.broadcast %4 : i32 to vector<8x1xi32>
    %6 = arith.addi %5, %3 : vector<8x1xi32>
    %c13_i32 = arith.constant 13 : i32
    %7 = vector.broadcast %c13_i32 : i32 to vector<8x1xi32>
    %8 = arith.cmpi slt, %6, %7 : vector<8x1xi32>
    %9 = tpu.iota {dimensions = array<i32: 1>} : vector<8x32xi32>
    %10 = vector.broadcast %1 : vector<8x1xi32> to vector<8x32xi32>
    %11 = arith.cmpi eq, %9, %10 : vector<8x32xi32>
    %cst = arith.constant dense<0xFF800000> : vector<8xf32>
    %12 = vector.multi_reduction <maximumf>, %0, %cst [1] : vector<8x32xf32> to vector<8xf32>
    %13 = vector.shape_cast %12 : vector<8xf32> to vector<8x1xf32>
    %14 = vector.broadcast %13 : vector<8x1xf32> to vector<8x32xf32>
    %15 = arith.subf %0, %14 : vector<8x32xf32>
    %16 = math.exp %15 : vector<8x32xf32>
    %cst_5 = arith.constant dense<0.000000e+00> : vector<8xf32>
    %17 = vector.multi_reduction <add>, %16, %cst_5 [1] : vector<8x32xf32> to vector<8xf32>
    %18 = vector.shape_cast %17 : vector<8xf32> to vector<8x1xf32>
    %cst_6 = arith.constant 0.000000e+00 : f32
    %19 = vector.broadcast %cst_6 : f32 to vector<8x32xf32>
    %20 = arith.select %11, %0, %19 : vector<8x32xi1>, vector<8x32xf32>
    %cst_7 = arith.constant dense<0.000000e+00> : vector<8xf32>
    %21 = vector.multi_reduction <add>, %20, %cst_7 [1] : vector<8x32xf32> to vector<8xf32>
    %22 = vector.shape_cast %21 : vector<8xf32> to vector<8x1xf32>
    %cst_8 = arith.constant 0.000000e+00 : f32
    %23 = vector.broadcast %cst_8 : f32 to vector<8x32xf32>
    %24 = arith.select %11, %16, %23 : vector<8x32xi1>, vector<8x32xf32>
    %cst_9 = arith.constant dense<0.000000e+00> : vector<8xf32>
    %25 = vector.multi_reduction <add>, %24, %cst_9 [1] : vector<8x32xf32> to vector<8xf32>
    %26 = vector.shape_cast %25 : vector<8xf32> to vector<8x1xf32>
    %27 = arith.subf %22, %13 : vector<8x1xf32>
    %28 = math.log %18 : vector<8x1xf32>
    %29 = arith.subf %27, %28 : vector<8x1xf32>
    %30 = arith.divf %26, %18 : vector<8x1xf32>
    %cst_10 = arith.constant 1.000000e+00 : f32
    %31 = vector.broadcast %cst_10 : f32 to vector<8x1xf32>
    %32 = arith.subf %31, %30 : vector<8x1xf32>
    %cst_11 = arith.constant 0.000000e+00 : f32
    %33 = vector.broadcast %cst_11 : f32 to vector<8x1xf32>
    %34 = arith.maximumf %32, %33 : vector<8x1xf32>
    %35 = arith.mulf %34, %34 : vector<8x1xf32>
    %36 = arith.mulf %35, %29 : vector<8x1xf32>
    %cst_12 = arith.constant 0.000000e+00 : f32
    %37 = vector.broadcast %cst_12 : f32 to vector<8x1xf32>
    %38 = arith.subf %37, %2 : vector<8x1xf32>
    %39 = arith.mulf %38, %36 : vector<8x1xf32>
    %cst_13 = arith.constant 0.000000e+00 : f32
    %40 = vector.broadcast %cst_13 : f32 to vector<8x1xf32>
    %41 = arith.select %8, %39, %40 : vector<8x1xi1>, vector<8x1xf32>
    %cst_14 = arith.constant 0.000000e+00 : f32
    %42 = vector.broadcast %cst_14 : f32 to vector<8x1xf32>
    %43 = arith.select %8, %2, %42 : vector<8x1xi1>, vector<8x1xf32>
    %cst_15 = arith.constant dense<0.000000e+00> : vector<1xf32>
    %44 = vector.multi_reduction <add>, %41, %cst_15 [0] : vector<8x1xf32> to vector<1xf32>
    %45 = vector.shape_cast %44 : vector<1xf32> to vector<1x1xf32>
    %cst_16 = arith.constant dense<0.000000e+00> : vector<1xf32>
    %46 = vector.multi_reduction <add>, %43, %cst_16 [0] : vector<8x1xf32> to vector<1xf32>
    %47 = vector.shape_cast %46 : vector<1xf32> to vector<1x1xf32>
    %48 = tpu.iota {dimensions = array<i32: 1>} : vector<1x8x128xi32>
    %c0_i32 = arith.constant 0 : i32
    %49 = vector.broadcast %c0_i32 : i32 to vector<1x8x128xi32>
    %50 = arith.cmpi eq, %48, %49 : vector<1x8x128xi32>
    %cst_17 = arith.constant 0.000000e+00 : f32
    %51 = vector.shape_cast %45 : vector<1x1xf32> to vector<1x1x1xf32>
    %52 = vector.broadcast %51 : vector<1x1x1xf32> to vector<1x8x128xf32>
    %53 = vector.broadcast %cst_17 : f32 to vector<1x8x128xf32>
    %54 = arith.select %50, %52, %53 : vector<1x8x128xi1>, vector<1x8x128xf32>
    %c1_i32 = arith.constant 1 : i32
    %55 = vector.broadcast %c1_i32 : i32 to vector<1x8x128xi32>
    %56 = arith.cmpi eq, %48, %55 : vector<1x8x128xi32>
    %cst_18 = arith.constant 0.000000e+00 : f32
    %57 = vector.shape_cast %47 : vector<1x1xf32> to vector<1x1x1xf32>
    %58 = vector.broadcast %57 : vector<1x1x1xf32> to vector<1x8x128xf32>
    %59 = vector.broadcast %cst_18 : f32 to vector<1x8x128xf32>
    %60 = arith.select %56, %58, %59 : vector<1x8x128xi1>, vector<1x8x128xf32>
    %61 = arith.addf %54, %60 : vector<1x8x128xf32>
    %c0_19 = arith.constant 0 : index
    %c0_20 = arith.constant 0 : index
    %c0_21 = arith.constant 0 : index
    %62 = vector.load %arg4[%c0_19, %c0_20, %c0_21] : memref<1x8x128xf32, #tpu.memory_space<vmem>>, vector<1x8x128xf32>
    tpu.vector_store %arg4[%c0_19, %c0_20, %c0_21], %61 {strides = array<i32>} : memref<1x8x128xf32, #tpu.memory_space<vmem>>, vector<1x8x128xf32>,
    return
  }
  func.func @transform_0(%arg0: i32) -> (i32, i32) {
    %c0_i32 = arith.constant 0 : i32
    %c0_i32_0 = arith.constant 0 : i32
    return %arg0, %c0_i32 : i32, i32
  }
  func.func @transform_1(%arg0: i32) -> (i32, i32) {
    %c0_i32 = arith.constant 0 : i32
    %c0_i32_0 = arith.constant 0 : i32
    return %arg0, %c0_i32 : i32, i32
  }
  func.func @transform_2(%arg0: i32) -> (i32, i32) {
    %c0_i32 = arith.constant 0 : i32
    %c0_i32_0 = arith.constant 0 : i32
    return %arg0, %c0_i32 : i32, i32
  }
  func.func @transform_3(%arg0: i32) -> (i32, i32, i32) {
    %c0_i32 = arith.constant 0 : i32
    %c0_i32_0 = arith.constant 0 : i32
    %c0_i32_1 = arith.constant 0 : i32
    return %arg0, %c0_i32, %c0_i32_0 : i32, i32, i32
  }
}

</mosaic_0001>

<bundles_post_ra>
// kernel: tpu_custom_call.1
= control target key start
LH: loop header
LB: loop body
LE: loop exit
PB: predicated region body
PF: predicated region fallthrough
CT: control target
= control target key end

     0   :  { %8 = vsyncpa [#allocation3], 0  ;;  %s625_s0 = inlined_call_operand.vmem [shape: f32[13,32], index: 0, kind: input, shape index: {}]   ;;  %s626_s1 = inlined_call_operand.vmem [shape: s32[16,1], index: 1, kind: input, shape index: {}]   ;;  %s627_s2 = inlined_call_operand.vmem [shape: f32[16,1], index: 2, kind: input, shape index: {}]   ;;  %s628_s3 = inlined_call_operand.hbm [shape: f32[2,8,128], index: 3, kind: output, shape index: {}]  }
   0x1   :  { %10 = vsyncpa [#allocation3 + $0x1], 0  ;;  %s520_s12 = smov 0   ;;  %s522_s13 = smov 0  }
   0x2   :  { %s524_s14 = smov 0   ;;  %s526_s15 = smov 0  }
   0x3 LB: > { %s541_s16 = sadd.s32 4294967295, %s496_s15   ;;  %s375_s17 = sadd.s32 4294967294, %s496_s15   ;;  %s496_s15 = sphi %s526_s15, %s634_s15   ;;  %s492_s14 = sphi %s524_s14, %s633_s14   ;;  %s488_s13 = sphi %s522_s13, %s632_s13   ;;  %s484_s12 = sphi %s520_s12, %s631_s12  }
   0x4   : > { %s545_s18 = sadd.s32 1, %s496_s15   ;;  %s101_s19 = sadd.s32 1, %s492_s14 }
   0x5   : > { %s98_s20 = ssub.s32 %s496_s15, %s545_s18  ;;  %p111_p0 = scmp.ne.s32.totalorder %s492_s14, %s488_s13 }
   0x6   : > { %p99_p1 = scmp.eq.s32.totalorder %s98_s20, 0  ;;  %p112_p2 = scmp.eq.s32.totalorder %s541_s16, 1 }
   0x7   : > { %p117_p3 = scmp.ne.s32.totalorder %s488_s13, %s484_s12  ;;  %p118_p4 = scmp.eq.s32.totalorder %s375_s17, 1 }
   0x8   : > { %s556_s21 = scalar_select %p99_p1, %s492_s14, %s101_s19  }
   0x9   : > { %p558_p5 = por %p112_p2, %p111_p0  ;;  %p562_p6 = por %p118_p4, %p117_p3 }
   0xa   : > { %p378_p7 = scmp.ge.s32.totalorder %s496_s15, 1  ;;  %p157_p8 = scmp.lt.s32.totalorder %s496_s15, 3 }
   0xc   : > { %p158_p9 = pnand %p378_p7, %p157_p8 }
   0xd   : > { %p188_p10 = scmp.lt.s32.totalorder (!%p158_p9), %s541_s16, 1  ;;  %s383_s5 = sshll.u32 (!%p158_p9), %s541_s16, 3 }
   0xe   : > { %161 = sbr.rel (%p158_p9) target bundleno = 505 (0x1f9), region = 32  ;;  %s185_s9 = sand.u32 (!%p158_p9), 1, %s488_s13  }
   0xf   : > { %s379_s10 = sshll.u32 (!%p158_p9), %s185_s9, 3  ;;  %s385_s11 = sshll.u32 (!%p158_p9), %s541_s16, 7 }
  0x10   : > { %s187_s17 = scalar_lea.vmem (!%p158_p9), [#allocation2], %s379_s10  ;;  %s279_s26 = scalar_lea.sflag (!%p158_p9), [#allocation3], %s185_s9 }
  0x11   : > { %s292_s19 = sshll.u32 (!%p158_p9), %s187_s17, 4  ;;  %s293_s19 = int_to_ptr.vmem [resolvable:$true] %s292_s19 }
  0x12   : > { %s436_s27 = scalar_lea.vmem (!%p158_p9), %s293_s19, 128 }
  0x13   : > { %v498_v0 = vmov 0   ;;  %s189_s24 = scalar_select %p188_p10, %s541_s16, 1  ;;  %vm215_vm0 = vcmask 261120   ;;  %v203_v7 = vlaneseq  ;;  %v206_v18 = vstv %s383_s5 }
  0x14   : > { %428 = vset.pattern.permute.xlu0 %v498_v0  ;;  %429 = vset.pattern.permute.xlu1 %v498_v0  ;;  %vm247_vm3 = vcmask 7168   ;;  %p437_p11 = scmp.ne.s32.totalorder %s293_s19, %s436_s27 }
  0x15   : > { %s570_s25 = sshll.u32 %s189_s24, 3  ;;  %v210_v8 = vand.u32 127, %v203_v7  ;;  %v204_v17 = vshrl.u32 %v203_v7, 7 }
  0x16   : > { %s191_s28 = scalar_lea.vmem %s625_s0, %s570_s25  ;;  %s195_s4 = scalar_lea.vmem %s626_s1, %s570_s25 }
  0x17   : > { %v200_v1 = vld [vmem:[%s191_s28] sm:$0xff]  ;;  %v207_v20 = vadd.s32 %v206_v18, %v204_v17  ;;  %s199_s8 = scalar_lea.vmem %s627_s2, %s570_s25  ;;  %vm262_vm4 = vcmp.eq.s32.totalorder %v204_v17, 0  ;;  %vm269_vm5 = vcmp.eq.s32.totalorder %v204_v17, 1  ;;  %s290_s25 = scalar_lea.hbm %s628_s3, %s385_s11 }
  0x18   : > { %v216_v2 = vsel %vm215_vm0, %v200_v1, -inf  ;;  %v201_v3 = vld [vmem:[%s195_s4] sm:$0xff]  ;;  %p438_p12 = pnand %p437_p11, %p558_p5  ;;  %s499_s28 = smov [#allocation2]  }
  0x19   : > { %217 = vmax.xlane.f32.xlu0 %v216_v2  ;;  %v202_v23 = vld [vmem:[%s199_s8] sm:$0xff]  ;;  %vm208_vm2 = vcmp.lt.s32.totalorder %v207_v20, 13  ;;  %s440_s16 = sshll.u32 %s499_s28, 4  ;;  %s441_s16 = int_to_ptr.vmem [resolvable:$false] %s440_s16 }
  0x1a   : > { %v246_v25 = vsel %vm208_vm2, %v202_v23, 0.0  ;;  %v243_v32 = vsub.f32 0.0, %v202_v23  ;;  %p439_p13 = pneg %p438_p12  ;;  %s442_s29 = scalar_lea.vmem %s441_s16, 256 }
  0x1b   : > { %v255_v29 = vsel %vm247_vm3, %v246_v25, 0.0  ;;  %p443_p0 = scmp.lt.s32.totalorder %s293_s19, %s441_s16  ;;  %p444_p1 = scmp.lt.s32.totalorder %s442_s29, %s436_s27 }
  0x1c   : > { %v256_v35 = vrot.slane %v255_v29, 4 }
  0x1d   : > { %p445_p2 = por %p444_p1, %p443_p0 }
  0x1e   : > { %v257_v38 = vadd.f32 %v256_v35, %v255_v29 }
  0x1f   : > { %p446_p3 = pnand %p445_p2, %p439_p13 }
  0x20   : > { %v258_v42 = vrot.slane %v257_v38, 2 }
  0x22   : > { %v259_v45 = vadd.f32 %v258_v42, %v257_v38 }
  0x24   : > { %v260_v48 = vrot.slane %v259_v45, 1 }
  0x26   : > { %v261_v50 = vadd.f32 %v260_v48, %v259_v45 }
  0x2f   : > { %212 = vperm.xlu0 %428, %v201_v3  }
  0xa2   : > { %v218_v4 = vpop.xlane.xlu0 %217 }
  0xa3   : > { %v219_v5 = vsub.f32 %v200_v1, %v218_v4 }
  0xa5   : > { %v220_v6 = vmul.f32 1.442695, %v219_v5 }
  0xa7   : > { %430 = vpow2.f32 %v220_v6 }
  0xaa   : > { %v213_v9 = vpop.permute.xlu0 %212 }
  0xab   : > { %vm214_vm1 = vcmp.eq.s32.totalorder %v210_v8, %v213_v9 }
  0xac   : > { %v225_v13 = vsel %vm214_vm1, %v200_v1, 0.0 }
  0xad   : > { %v226_v15 = vsel %vm215_vm0, %v225_v13, 0.0 }
  0xb4   : > { %v431_v10 = vpop.eup %430 }
  0xb5   : > { %v222_v11 = vsel %vm215_vm0, %v431_v10, 0.0  ;;  %v229_v12 = vsel %vm214_vm1, %v431_v10, 0.0 }
  0xb6   : > { %223 = vadd.xlane.f32.xlu1 %v222_v11  ;;  %v230_v14 = vsel %vm215_vm0, %v229_v12, 0.0 }
  0xba   : > { %231 = vadd.xlane.f32.xlu1 %v230_v14 }
  0xbe   : > { %227 = vadd.xlane.f32.xlu1 %v226_v15 }
 0x13f   : > { %v224_v16 = vpop.xlane.xlu1 %223 }
 0x140   : > { %432 = vlog2.f32 %v224_v16 }
 0x141   : > { %434 = vrcp.f32 %v224_v16 }
 0x143   : > { %v232_v19 = vpop.xlane.xlu1 %231 }
 0x147   : > { %v228_v26 = vpop.xlane.xlu1 %227 }
 0x148   : > { %v233_v31 = vsub.f32 %v228_v26, %v218_v4 }
 0x14d   : > { %v433_v21 = vpop.eup %432 }
 0x14e   : > { %v435_v22 = vpop.eup %434  ;;  %v235_v28 = vmul.f32 0.6931472, %v433_v21 }
 0x14f   : > { %v238_v24 = vmul.f32 %v435_v22, %v232_v19 }
 0x150   : > { %v236_v34 = vsub.f32 %v233_v31, %v235_v28 }
 0x151   : > { %v239_v27 = vsub.f32 1.0, %v238_v24 }
 0x153   : > { %v240_v30 = vmax.f32 %v239_v27, 0.0 }
 0x155   : > { %v241_v33 = vmul.f32 %v240_v30, %v240_v30 }
 0x157   : > { %v242_v36 = vmul.f32 %v241_v33, %v236_v34 }
 0x159   : > { %v244_v37 = vmul.f32 %v243_v32, %v242_v36 }
 0x15b   : > { %v245_v39 = vsel %vm208_vm2, %v244_v37, 0.0 }
 0x15c   : > { %v248_v40 = vsel %vm247_vm3, %v245_v39, 0.0 }
 0x15d   : > { %v249_v41 = vrot.slane %v248_v40, 4 }
 0x15f   : > { %v250_v43 = vadd.f32 %v249_v41, %v248_v40 }
 0x161   : > { %v251_v44 = vrot.slane %v250_v43, 2 }
 0x163   : > { %v252_v46 = vadd.f32 %v251_v44, %v250_v43 }
 0x165   : > { %v253_v47 = vrot.slane %v252_v46, 1 }
 0x167   : > { %v254_v49 = vadd.f32 %v253_v47, %v252_v46 }
 0x169   : > { %265 = vperm.xlu1 %429, %v254_v49  }
 0x16d   : > { %272 = vperm.xlu1 %429, %v261_v50  }
 0x1e4   : > { %v266_v51 = vpop.permute.xlu1 %265 }
 0x1e5   : > { %v268_v53 = vsel %vm262_vm4, %v266_v51, 0.0 }
 0x1e8   : > { %v273_v52 = vpop.permute.xlu1 %272 }
 0x1e9   : > { %v275_v54 = vsel %vm269_vm5, %v273_v52, 0.0 }
 0x1ea   : > { %v276_v55 = vadd.f32 %v275_v54, %v268_v53 }
 0x1ec   : > { %277 = vst [vmem:[%s187_s17] sm:$0xff] %v276_v55 }
 0x1ed   : > { %449 = shalt.err (!%p446_p3)
}
 0x1ee   : > { %s450_s30 = scalar_lea.hbm %s290_s25, 128  ;;  %s454_s6 = scalar_lea.hbm %s628_s3, 256 }
 0x1ef   : > { %p451_p4 = scmp.ne.s32.totalorder %s290_s25, %s450_s30  ;;  %p455_p9 = scmp.lt.s32.totalorder %s290_s25, %s628_s3 }
 0x1f0   : > { %p456_p10 = scmp.lt.s32.totalorder %s454_s6, %s450_s30 }
 0x1f1   : > { %p452_p7 = pnand %p451_p4, %p558_p5 }
 0x1f2   : > { %p457_p11 = por %p456_p10, %p455_p9 }
 0x1f3   : > { %p453_p8 = pneg %p452_p7 }
 0x1f5   : > { %p458_p12 = pnand %p457_p11, %p453_p8 }
 0x1f7   : > { %461 = shalt.err (!%p458_p12)
}
 0x1f8   : > { %388 = dma.vmem_to_hbm [thread:$0]  (%p558_p5), %s293_s19, 128, %s290_s25, %s279_s26  }
 0x1f9 PF: > { %p394_p13 = scmp.ge.s32.totalorder %s496_s15, 2  ;;  %s304_s9 = sand.u32 1, %s484_s12  }
 0x1fa   : > { %s305_s10 = scalar_lea.sflag [#allocation3], %s304_s9 }
 0x1fb   : > { %p391_p0 = pnand %p394_p13, %p562_p6 }
 0x1fd   : > { %p392_p1 = pneg %p391_p0 }
 0x1ff   : > { %479 = dma.done.wait (%p392_p1), %s305_s10, 128  }
 0x200   : > { %481 = vsyncadd (%p392_p1), %s305_s10, 4294967168  ;;  %p13_p2 = scmp.ge.s32.totalorder %s545_s18, 4   ;;  %s631_s12 = smov %s488_s13 }
 0x201   : > { %s632_s13 = smov %s492_s14  ;;  %s633_s14 = smov %s556_s21 }
 0x202   : > { %s634_s15 = smov %s545_s18  ;;  %15 = sbr.rel (!%p13_p2) target bundleno = 3 (0x3), region = 73 }
 0x207   :  { %310 = vsyncpa [#allocation3], 1 }
 0x208   :  { %312 = vsyncpa [#allocation3 + $0x1], 1 }

</bundles_post_ra>
